<compile_context>
chip_gen: v7x
topology: tpu7x:2x2x1
jax: 0.10.0
libtpu: 0.0.40
codegen_flags: <defaults>
</compile_context>

<pallas_src>
import jax
import jax.numpy as jnp
from jax.experimental import pallas as pl
from jax.experimental.pallas import tpu as pltpu


def _round_up(x: int, m: int) -> int:
    return ((x + m - 1) // m) * m


def synapse_kernel(x_ref, w1_ref, b1_ref, w2_ref, b2_ref, w3_ref, b3_ref, o_ref):
    # Cast the f32 input tile to bf16 right before the MXU (free VPU work;
    # avoids a separate wrapper-side HBM pass over x).
    x = x_ref[...].astype(jnp.bfloat16)

    # Layer 1: bf16 MXU matmul, f32 accumulate, f32 bias + ReLU (VPU).
    h1 = jnp.dot(x, w1_ref[...], preferred_element_type=jnp.float32)
    h1 = jnp.maximum(h1 + b1_ref[...], 0.0).astype(jnp.bfloat16)

    # Layer 2.
    h2 = jnp.dot(h1, w2_ref[...], preferred_element_type=jnp.float32)
    h2 = jnp.maximum(h2 + b2_ref[...], 0.0).astype(jnp.bfloat16)

    # Output layer + sigmoid (EUP) in f32; store only the real out_dim columns
    # (masked vst, but 8x fewer HBM writeback bytes than a 128-padded f32 slab).
    z = jnp.dot(h2, w3_ref[...], preferred_element_type=jnp.float32) + b3_ref[...]
    o_ref[...] = jax.nn.sigmoid(z)


def prepare_params(params):
    """One-time padding + bf16 cast of the weights (hoisted out of the hot path).

    Weights are stored transposed vs. PyTorch: w* is (in_features, out_features),
    b* is (1, out_features), so the kernel computes x @ W + b directly.
    Hidden widths are zero-padded up to multiples of 128 (lane-dense MXU
    operands); zero rows/cols + ReLU(0)=0 keep the real columns exact.
    The final output width is NOT padded (real-width store).
    """
    w1, b1 = params["w1"], params["b1"]
    w2, b2 = params["w2"], params["b2"]
    w3, b3 = params["w3"], params["b3"]
    h1 = w1.shape[1]
    h2 = w2.shape[1]
    out_dim = w3.shape[1]
    h1p = _round_up(h1, 128)
    h2p = _round_up(h2, 128)

    def pad2(a, rows, cols):
        return jnp.pad(a, ((0, rows - a.shape[0]), (0, cols - a.shape[1])))

    return dict(
        w1=pad2(w1, w1.shape[0], h1p).astype(jnp.bfloat16),
        b1=pad2(b1, 1, h1p).astype(jnp.float32),
        w2=pad2(w2, h1p, h2p).astype(jnp.bfloat16),
        b2=pad2(b2, 1, h2p).astype(jnp.float32),
        w3=pad2(w3, h2p, out_dim).astype(jnp.bfloat16),
        b3=b3.astype(jnp.float32),
    )


def _pick_batch_tile(B: int) -> int:
    """Fat batch tiles: one step for small B; >=2 parallel steps for large B."""
    Bp8 = _round_up(B, 8)
    if Bp8 <= 1024:
        return Bp8
    # Keep at least 2 grid steps so v7x's dual TensorCores both get work,
    # but cap the tile at 2048 rows (amortizes per-step overhead, tiny VMEM).
    half = _round_up(pl.cdiv(Bp8, 2), 256)
    return min(2048, half)


def synapse_forward(x, prep):
    """x: (B, input_size) float32. prep: output of prepare_params()."""
    x = jnp.asarray(x, jnp.float32)
    B, in_dim = x.shape
    w1, b1 = prep["w1"], prep["b1"]
    w2, b2 = prep["w2"], prep["b2"]
    w3, b3 = prep["w3"], prep["b3"]
    h1p = w1.shape[1]
    h2p = w2.shape[1]
    out_dim = w3.shape[1]

    tb = _pick_batch_tile(B)
    Bp = _round_up(B, tb)
    grid = (Bp // tb,)
    if Bp != B:
        x = jnp.pad(x, ((0, Bp - B), (0, 0)))

    # Advisory cost estimate for XLA scheduling around the custom call.
    flops = 2 * Bp * (in_dim * h1p + h1p * h2p + h2p * out_dim)
    transcendentals = Bp * out_dim  # sigmoid
    bytes_accessed = (
        Bp * in_dim * 4                                  # x (f32 in)
        + (w1.size + w2.size + w3.size) * 2              # bf16 weights
        + (b1.size + b2.size + b3.size) * 4              # f32 biases
        + Bp * out_dim * 4                               # f32 out
    )
    cost = pl.CostEstimate(
        flops=flops, transcendentals=transcendentals, bytes_accessed=bytes_accessed
    )

    # Whole-array, single-buffered VMEM residency for weights/biases.
    def resident():
        return pl.BlockSpec(memory_space=pltpu.MemorySpace.VMEM)

    out = pl.pallas_call(
        synapse_kernel,
        out_shape=jax.ShapeDtypeStruct((Bp, out_dim), jnp.float32),
        grid_spec=pltpu.PrefetchScalarGridSpec(
            num_scalar_prefetch=0,
            grid=grid,
            in_specs=[
                pl.BlockSpec((tb, in_dim), lambda i: (i, 0)),  # x tile (f32)
                resident(),  # w1
                resident(),  # b1
                resident(),  # w2
                resident(),  # b2
                resident(),  # w3
                resident(),  # b3
            ],
            out_specs=pl.BlockSpec((tb, out_dim), lambda i: (i, 0)),
        ),
        compiler_params=pltpu.CompilerParams(
            dimension_semantics=("parallel",),
            vmem_limit_bytes=32 * 1024 * 1024,
        ),
        cost_estimate=cost,
    )(x, w1, b1, w2, b2, w3, b3)

    # Strip batch padding only (output width is already exact).
    return out[:B]


def init_params(key, input_size, output_size):
    """Mimics PyTorch nn.Linear default init: U(-1/sqrt(fan_in), +1/sqrt(fan_in))."""

    def linear(key, fan_in, fan_out):
        kw, kb = jax.random.split(key)
        bound = 1.0 / jnp.sqrt(fan_in)
        w = jax.random.uniform(kw, (fan_in, fan_out), jnp.float32, -bound, bound)
        b = jax.random.uniform(kb, (1, fan_out), jnp.float32, -bound, bound)
        return w, b

    k1, k2, k3 = jax.random.split(key, 3)
    w1, b1 = linear(k1, input_size, 128)
    w2, b2 = linear(k2, 128, 64)
    w3, b3 = linear(k3, 64, output_size)
    return dict(w1=w1, b1=b1, w2=w2, b2=b2, w3=w3, b3=b3)


def reference_forward(x, p):
    h1 = jnp.maximum(x @ p["w1"] + p["b1"], 0.0)
    h2 = jnp.maximum(h1 @ p["w2"] + p["b2"], 0.0)
    return jax.nn.sigmoid(h2 @ p["w3"] + p["b3"])


if __name__ == "__main__":
    key = jax.random.PRNGKey(0)
    k_param, k_x1, k_x2, k_x3 = jax.random.split(key, 4)

    input_size = 32
    output_size = 16
    params = init_params(k_param, input_size, output_size)
    prep = prepare_params(params)  # one-time padding + bf16 cast

    # Main check (8-aligned small batch, single grid step).
    x = jax.random.normal(k_x1, (64, input_size), jnp.float32)
    out = jax.block_until_ready(synapse_forward(x, prep))
    ref = reference_forward(x, params)
    assert out.shape == (64, output_size)
    # bf16 MXU operands with f32 accumulation -> relaxed tolerance vs f32 ref.
    assert jnp.allclose(out, ref, atol=2e-2, rtol=2e-2), "mismatch vs JAX reference"

    # Ragged-batch check (exercises the wrapper padding/slicing path).
    x2 = jax.random.normal(k_x2, (5, input_size), jnp.float32)
    out2 = jax.block_until_ready(synapse_forward(x2, prep))
    ref2 = reference_forward(x2, params)
    assert out2.shape == (5, output_size)
    assert jnp.allclose(out2, ref2, atol=2e-2, rtol=2e-2), "ragged mismatch"

    # Larger batch: exercises the fat-tile path with 2 parallel grid steps.
    x3 = jax.random.normal(k_x3, (2560, input_size), jnp.float32)
    out3 = jax.block_until_ready(synapse_forward(x3, prep))
    ref3 = reference_forward(x3, params)
    assert out3.shape == (2560, output_size)
    assert jnp.allclose(out3, ref3, atol=2e-2, rtol=2e-2), "large-batch mismatch"

    print("KERNEL_OK")
</pallas_src>

<mosaic_0001>
module attributes {stable_mosaic.version = 11 : i64} {
  func.func @synapse_kernel(%arg0: i32, %arg1: memref<64x32xf32, #tpu.memory_space<vmem>>, %arg2: memref<32x128xbf16, #tpu.memory_space<vmem>>, %arg3: memref<1x128xf32, #tpu.memory_space<vmem>>, %arg4: memref<128x128xbf16, #tpu.memory_space<vmem>>, %arg5: memref<1x128xf32, #tpu.memory_space<vmem>>, %arg6: memref<128x16xbf16, #tpu.memory_space<vmem>>, %arg7: memref<1x16xf32, #tpu.memory_space<vmem>>, %arg8: memref<64x16xf32, #tpu.memory_space<vmem>>) attributes {dimension_semantics = [#tpu.dimension_semantics<parallel>], iteration_bounds = array<i64: 1>, scalar_prefetch = 0 : i64, scratch_operands = 0 : i64, tpu.core_type = #tpu.core_type<tc>, window_params = [{transform_indices = @transform_0, window_bounds = array<i64: 64, 32>}, {pipeline_mode = #tpu.pipeline_mode<synchronous>, transform_indices = @transform_1, window_bounds = array<i64: 32, 128>}, {pipeline_mode = #tpu.pipeline_mode<synchronous>, transform_indices = @transform_2, window_bounds = array<i64: 1, 128>}, {pipeline_mode = #tpu.pipeline_mode<synchronous>, transform_indices = @transform_3, window_bounds = array<i64: 128, 128>}, {pipeline_mode = #tpu.pipeline_mode<synchronous>, transform_indices = @transform_4, window_bounds = array<i64: 1, 128>}, {pipeline_mode = #tpu.pipeline_mode<synchronous>, transform_indices = @transform_5, window_bounds = array<i64: 128, 16>}, {pipeline_mode = #tpu.pipeline_mode<synchronous>, transform_indices = @transform_6, window_bounds = array<i64: 1, 16>}, {transform_indices = @transform_7, window_bounds = array<i64: 64, 16>}]} {
    %c0 = arith.constant 0 : index
    %c0_0 = arith.constant 0 : index
    %0 = vector.load %arg1[%c0, %c0_0] : memref<64x32xf32, #tpu.memory_space<vmem>>, vector<64x32xf32>
    %1 = arith.truncf %0 : vector<64x32xf32> to vector<64x32xbf16>
    %c0_1 = arith.constant 0 : index
    %c0_2 = arith.constant 0 : index
    %2 = vector.load %arg2[%c0_1, %c0_2] : memref<32x128xbf16, #tpu.memory_space<vmem>>, vector<32x128xbf16>
    %cst = arith.constant dense<0.000000e+00> : vector<64x128xf32>
    %3 = tpu.matmul %1, %2, %cst {dimension_numbers = #tpu.dot_dimension_numbers<[1], [0], [0], [1], [0, 0, 1, 1], [], []>} : vector<64x32xbf16>, vector<32x128xbf16>, vector<64x128xf32> -> vector<64x128xf32>
    %c0_3 = arith.constant 0 : index
    %c0_4 = arith.constant 0 : index
    %4 = vector.load %arg3[%c0_3, %c0_4] : memref<1x128xf32, #tpu.memory_space<vmem>>, vector<1x128xf32>
    %5 = vector.broadcast %4 : vector<1x128xf32> to vector<64x128xf32>
    %6 = arith.addf %3, %5 : vector<64x128xf32>
    %cst_5 = arith.constant 0.000000e+00 : f32
    %7 = vector.broadcast %cst_5 : f32 to vector<64x128xf32>
    %8 = arith.maximumf %6, %7 : vector<64x128xf32>
    %9 = arith.truncf %8 : vector<64x128xf32> to vector<64x128xbf16>
    %c0_6 = arith.constant 0 : index
    %c0_7 = arith.constant 0 : index
    %10 = vector.load %arg4[%c0_6, %c0_7] : memref<128x128xbf16, #tpu.memory_space<vmem>>, vector<128x128xbf16>
    %cst_8 = arith.constant dense<0.000000e+00> : vector<64x128xf32>
    %11 = tpu.matmul %9, %10, %cst_8 {dimension_numbers = #tpu.dot_dimension_numbers<[1], [0], [0], [1], [0, 0, 1, 1], [], []>} : vector<64x128xbf16>, vector<128x128xbf16>, vector<64x128xf32> -> vector<64x128xf32>
    %c0_9 = arith.constant 0 : index
    %c0_10 = arith.constant 0 : index
    %12 = vector.load %arg5[%c0_9, %c0_10] : memref<1x128xf32, #tpu.memory_space<vmem>>, vector<1x128xf32>
    %13 = vector.broadcast %12 : vector<1x128xf32> to vector<64x128xf32>
    %14 = arith.addf %11, %13 : vector<64x128xf32>
    %cst_11 = arith.constant 0.000000e+00 : f32
    %15 = vector.broadcast %cst_11 : f32 to vector<64x128xf32>
    %16 = arith.maximumf %14, %15 : vector<64x128xf32>
    %17 = arith.truncf %16 : vector<64x128xf32> to vector<64x128xbf16>
    %c0_12 = arith.constant 0 : index
    %c0_13 = arith.constant 0 : index
    %18 = vector.load %arg6[%c0_12, %c0_13] : memref<128x16xbf16, #tpu.memory_space<vmem>>, vector<128x16xbf16>
    %cst_14 = arith.constant dense<0.000000e+00> : vector<64x16xf32>
    %19 = tpu.matmul %17, %18, %cst_14 {dimension_numbers = #tpu.dot_dimension_numbers<[1], [0], [0], [1], [0, 0, 1, 1], [], []>} : vector<64x128xbf16>, vector<128x16xbf16>, vector<64x16xf32> -> vector<64x16xf32>
    %c0_15 = arith.constant 0 : index
    %c0_16 = arith.constant 0 : index
    %20 = vector.load %arg7[%c0_15, %c0_16] : memref<1x16xf32, #tpu.memory_space<vmem>>, vector<1x16xf32>
    %21 = vector.broadcast %20 : vector<1x16xf32> to vector<64x16xf32>
    %22 = arith.addf %19, %21 : vector<64x16xf32>
    %23 = arith.negf %22 : vector<64x16xf32>
    %24 = math.exp %23 : vector<64x16xf32>
    %cst_17 = arith.constant 1.000000e+00 : f32
    %25 = vector.broadcast %cst_17 : f32 to vector<64x16xf32>
    %26 = arith.addf %25, %24 : vector<64x16xf32>
    %27 = arith.divf %25, %26 : vector<64x16xf32>
    %c0_18 = arith.constant 0 : index
    %c0_19 = arith.constant 0 : index
    %28 = vector.load %arg8[%c0_18, %c0_19] : memref<64x16xf32, #tpu.memory_space<vmem>>, vector<64x16xf32>
    tpu.vector_store %arg8[%c0_18, %c0_19], %27 {strides = array<i32>} : memref<64x16xf32, #tpu.memory_space<vmem>>, vector<64x16xf32>,
    return
  }
  func.func @transform_0(%arg0: i32) -> (i32, i32) {
    %c0_i32 = arith.constant 0 : i32
    %c0_i32_0 = arith.constant 0 : i32
    return %arg0, %c0_i32 : i32, i32
  }
  func.func @transform_1(%arg0: i32) -> (i32, i32) {
    %c0_i32 = arith.constant 0 : i32
    %c0_i32_0 = arith.constant 0 : i32
    %c0_i32_1 = arith.constant 0 : i32
    return %c0_i32, %c0_i32_0 : i32, i32
  }
  func.func @transform_2(%arg0: i32) -> (i32, i32) {
    %c0_i32 = arith.constant 0 : i32
    %c0_i32_0 = arith.constant 0 : i32
    %c0_i32_1 = arith.constant 0 : i32
    return %c0_i32, %c0_i32_0 : i32, i32
  }
  func.func @transform_3(%arg0: i32) -> (i32, i32) {
    %c0_i32 = arith.constant 0 : i32
    %c0_i32_0 = arith.constant 0 : i32
    %c0_i32_1 = arith.constant 0 : i32
    return %c0_i32, %c0_i32_0 : i32, i32
  }
  func.func @transform_4(%arg0: i32) -> (i32, i32) {
    %c0_i32 = arith.constant 0 : i32
    %c0_i32_0 = arith.constant 0 : i32
    %c0_i32_1 = arith.constant 0 : i32
    return %c0_i32, %c0_i32_0 : i32, i32
  }
  func.func @transform_5(%arg0: i32) -> (i32, i32) {
    %c0_i32 = arith.constant 0 : i32
    %c0_i32_0 = arith.constant 0 : i32
    %c0_i32_1 = arith.constant 0 : i32
    return %c0_i32, %c0_i32_0 : i32, i32
  }
  func.func @transform_6(%arg0: i32) -> (i32, i32) {
    %c0_i32 = arith.constant 0 : i32
    %c0_i32_0 = arith.constant 0 : i32
    %c0_i32_1 = arith.constant 0 : i32
    return %c0_i32, %c0_i32_0 : i32, i32
  }
  func.func @transform_7(%arg0: i32) -> (i32, i32) {
    %c0_i32 = arith.constant 0 : i32
    %c0_i32_0 = arith.constant 0 : i32
    return %arg0, %c0_i32 : i32, i32
  }
}

</mosaic_0001>

<bundles_post_ra>
// kernel: tpu_custom_call.1
= control target key start
LH: loop header
LB: loop body
LE: loop exit
PB: predicated region body
PF: predicated region fallthrough
CT: control target
= control target key end

     0   :  { %vm62_vm0 = vcmask 261120   ;;  %vm484_vm1 = vcmask 130048   ;;  %s833_s1 = inlined_call_operand.vmem [shape: bf16[32,128], index: 1, kind: input, shape index: {}]   ;;  %s834_s0 = inlined_call_operand.vmem [shape: f32[64,32], index: 0, kind: input, shape index: {}]   ;;  %s835_s3 = inlined_call_operand.vmem [shape: bf16[128,128], index: 3, kind: input, shape index: {}]   ;;  %s836_s5 = inlined_call_operand.vmem [shape: bf16[128,16], index: 5, kind: input, shape index: {}]   ;;  %s837_s2 = inlined_call_operand.vmem [shape: f32[1,128], index: 2, kind: input, shape index: {}]   ;;  %s838_s4 = inlined_call_operand.vmem [shape: f32[1,128], index: 4, kind: input, shape index: {}]   ;;  %s839_s6 = inlined_call_operand.vmem [shape: f32[1,16], index: 6, kind: input, shape index: {}]   ;;  %s840_s7 = inlined_call_operand.vmem [shape: f32[64,16], index: 7, kind: output, shape index: {}]  }
   0x1   :  { %v620_v0 = vld [vmem:[%s833_s1] sm:$0xff]   ;;  %v621_v1 = vld [vmem:[%s833_s1 + $0x8] sm:$0xff]   ;;  %v29_v5 = vld [vmem:[%s834_s0 + $0x10] sm:$0xff] }
   0x2   :  { %560 = vmatprep.subr.bf16.mxu0 %v620_v0  ;;  %v27_v2 = vld [vmem:[%s834_s0] sm:$0xff]  ;;  %v28_v3 = vld [vmem:[%s834_s0 + $0x8] sm:$0xff]  ;;  %v30_v6 = vld [vmem:[%s834_s0 + $0x18] sm:$0xff] }
   0x3   :  { %561 = vmatpush3.bf16.msra.mxu0 %v620_v0  ;;  %v35_v4 = vpack.c.bf16 %v28_v3, %v27_v2  ;;  %v31_v7 = vld [vmem:[%s834_s0 + $0x20] sm:$0xff]  ;;  %v32_v8 = vld [vmem:[%s834_s0 + $0x28] sm:$0xff]  ;;  %v36_v10 = vpack.c.bf16 %v30_v6, %v29_v5  ;;  %v33_v13 = vld [vmem:[%s834_s0 + $0x30] sm:$0xff] }
   0x4   :  { %562 = vmatprep.subr.bf16.mxu0 %v621_v1  ;;  %v622_v9 = vld [vmem:[%s835_s3] sm:$0xff]   ;;  %v623_v11 = vld [vmem:[%s835_s3 + $0x8] sm:$0xff]   ;;  %v37_v12 = vpack.c.bf16 %v32_v8, %v31_v7  ;;  %v624_v14 = vld [vmem:[%s835_s3 + $0x10] sm:$0xff]  }
   0x5   :  { %564 = vmatprep.mubr.msk.bf16.mxu0 %vm62_vm0, %v35_v4  ;;  %572 = vmatprep.subr.bf16.mxu1 %v622_v9  ;;  %v34_v15 = vld [vmem:[%s834_s0 + $0x38] sm:$0xff]  ;;  %v626_v18 = vld [vmem:[%s835_s3 + $0x20] sm:$0xff]   ;;  %v627_v19 = vld [vmem:[%s835_s3 + $0x28] sm:$0xff]  }
   0x6   :  { %573 = vmatpush3.bf16.msra.mxu1 %v622_v9  ;;  %v625_v16 = vld [vmem:[%s835_s3 + $0x18] sm:$0xff]   ;;  %v38_v17 = vpack.c.bf16 %v34_v15, %v33_v13  ;;  %v628_v20 = vld [vmem:[%s835_s3 + $0x30] sm:$0xff]   ;;  %v630_v22 = vld [vmem:[%s836_s5] sm:$0xff]  }
   0x7   :  { %563 = vmatpush3.bf16.msra.mxu0 %v621_v1  ;;  %574 = vmatprep.subr.bf16.mxu1 %v623_v11  ;;  %v629_v21 = vld [vmem:[%s835_s3 + $0x38] sm:$0xff]   ;;  %v631_v23 = vld [vmem:[%s836_s5 + $0x8] sm:$0xff]   ;;  %v632_v24 = vld [vmem:[%s836_s5 + $0x10] sm:$0xff]  }
   0x8   :  { %596 = vmatprep.subr.bf16.mxu0 %v630_v22  ;;  %v633_v25 = vld [vmem:[%s836_s5 + $0x18] sm:$0xff]   ;;  %v634_v26 = vld [vmem:[%s836_s5 + $0x20] sm:$0xff]   ;;  %v635_v27 = vld [vmem:[%s836_s5 + $0x28] sm:$0xff]  }
   0x9   :  { %v497_v28 = vld [vmem:[%s837_s2] ss:$0 sm:$0xff]  ;;  %v636_v57 = vld [vmem:[%s836_s5 + $0x30] sm:$0xff]   ;;  %v637_v58 = vld [vmem:[%s836_s5 + $0x38] sm:$0xff]  }
   0xa   :  { %565 = vmatmul.mubr.msk.bf16.vlgmr.msra.gmra.mrb[0].mxu0 %vm62_vm0, %v36_v10  ;;  %575 = vmatpush3.bf16.msra.mxu1 %v623_v11  ;;  %v504_v59 = vld [vmem:[%s838_s4] ss:$0 sm:$0xff] }
   0xb   :  { %568 = vmatprep.mubr.msk.bf16.mxu0 %vm62_vm0, %v37_v12  ;;  %576 = vmatprep.subr.bf16.mxu1 %v624_v14 }
   0xc   :  { %597 = vmatpush3.bf16.msra.mxu0 %v630_v22 }
   0xd   :  { %598 = vmatprep.subr.bf16.mxu0 %v631_v23 }
   0xe   :  { %577 = vmatpush3.bf16.msra.mxu1 %v624_v14 }
   0xf   :  { %578 = vmatprep.subr.bf16.mxu1 %v625_v16 }
  0x10   :  { %599 = vmatpush3.bf16.msra.mxu0 %v631_v23 }
  0x11   :  { %600 = vmatprep.subr.bf16.mxu0 %v632_v24 }
  0x12   :  { %569 = vmatmul.mubr.msk.bf16.gmra.mrb[4].mxu0 %vm62_vm0, %v38_v17  ;;  %579 = vmatpush3.bf16.msra.mxu1 %v625_v16 }
  0x13   :  { %580 = vmatprep.subr.bf16.mxu1 %v626_v18 }
  0x14   :  { %601 = vmatpush3.bf16.msra.mxu0 %v632_v24  ;;  %v513_v24 = vld [vmem:[%s839_s6] ss:$0 sm:$0xff] }
  0x15   :  { %602 = vmatprep.subr.bf16.mxu0 %v633_v25 }
  0x16   :  { %581 = vmatpush3.bf16.msra.mxu1 %v626_v18 }
  0x17   :  { %582 = vmatprep.subr.bf16.mxu1 %v627_v19 }
  0x18   :  { %603 = vmatpush3.bf16.msra.mxu0 %v633_v25 }
  0x19   :  { %604 = vmatprep.subr.bf16.mxu0 %v634_v26 }
  0x1a   :  { %583 = vmatpush3.bf16.msra.mxu1 %v627_v19 }
  0x1b   :  { %584 = vmatprep.subr.bf16.mxu1 %v628_v20 }
  0x1c   :  { %605 = vmatpush3.bf16.msra.mxu0 %v634_v26 }
  0x1d   :  { %606 = vmatprep.subr.bf16.mxu0 %v635_v27 }
  0x1e   :  { %585 = vmatpush3.bf16.msra.mxu1 %v628_v20 }
  0x1f   :  { %586 = vmatprep.subr.bf16.mxu1 %v629_v21 }
  0x20   :  { %607 = vmatpush3.bf16.msra.mxu0 %v635_v27 }
  0x21   :  { %608 = vmatprep.subr.bf16.mxu0 %v636_v57 }
  0x22   :  { %587 = vmatpush3.bf16.msra.mxu1 %v629_v21 }
  0x24   :  { %609 = vmatpush3.bf16.msra.mxu0 %v636_v57 }
  0x25   :  { %610 = vmatprep.subr.bf16.mxu0 %v637_v58 }
  0x28   :  { %611 = vmatpush3.bf16.msra.mxu0 %v637_v58 }
  0xdd   :  { %v566_v29 = vpop.f32.mrb[0].mxu0 }
  0xde   :  { %v118_v30 = vadd.f32 %v566_v29, %v497_v28  ;;  %v109_v31 = vpop.f32.mrb[1].mxu0 }
  0xdf   :  { %v110_v32 = vadd.f32 %v497_v28, %v109_v31  ;;  %v567_v33 = vpop.f32.mrb[2].mxu0 }
  0xe0   :  { %v121_v34 = vadd.f32 %v567_v33, %v497_v28  ;;  %v112_v35 = vpop.f32.mrb[3].mxu0  ;;  %v142_v37 = vmax.f32 %v118_v30, 0.0 }
  0xe1   :  { %v113_v36 = vadd.f32 %v497_v28, %v112_v35  ;;  %v140_v39 = vmax.f32 %v110_v32, 0.0 }
  0xe2   :  { %v143_v38 = vmax.f32 %v121_v34, 0.0 }
  0xe3   :  { %v141_v40 = vmax.f32 %v113_v36, 0.0 }
  0xe4   :  { %v149_v41 = vpack.c.bf16 %v143_v38, %v142_v37 }
  0xe5   :  { %v570_v42 = vpop.f32.mrb[4].mxu0  ;;  %v148_v43 = vpack.c.bf16 %v141_v40, %v140_v39 }
  0xe6   :  { %v134_v44 = vadd.f32 %v570_v42, %v497_v28  ;;  %v125_v45 = vpop.f32.mrb[5].mxu0 }
  0xe7   :  { %v126_v46 = vadd.f32 %v497_v28, %v125_v45  ;;  %v571_v47 = vpop.f32.mrb[6].mxu0  ;;  %588 = vmatprep.mubr.bf16.mxu1 %v148_v43 }
  0xe8   :  { %v137_v48 = vadd.f32 %v571_v47, %v497_v28  ;;  %v128_v49 = vpop.f32.mrb[7].mxu0  ;;  %589 = vmatmul.mubr.bf16.vlgmr.msra.gmra.mrb[0].mxu1 %v149_v41  ;;  %v146_v51 = vmax.f32 %v134_v44, 0.0 }
  0xe9   :  { %v129_v50 = vadd.f32 %v497_v28, %v128_v49  ;;  %v144_v53 = vmax.f32 %v126_v46, 0.0 }
  0xea   :  { %v147_v52 = vmax.f32 %v137_v48, 0.0 }
  0xeb   :  { %v145_v54 = vmax.f32 %v129_v50, 0.0 }
  0xec   :  { %v151_v55 = vpack.c.bf16 %v147_v52, %v146_v51 }
  0xed   :  { %v150_v56 = vpack.c.bf16 %v145_v54, %v144_v53 }
  0xef   :  { %592 = vmatprep.mubr.bf16.mxu1 %v150_v56 }
  0xf0   :  { %593 = vmatmul.mubr.bf16.gmra.mrb[4].mxu1 %v151_v55 }
 0x1bb   :  { %v590_v60 = vpop.f32.mrb[0].mxu1 }
 0x1bc   :  { %v266_v61 = vadd.f32 %v590_v60, %v504_v59  ;;  %v257_v62 = vpop.f32.mrb[1].mxu1 }
 0x1bd   :  { %v258_v63 = vadd.f32 %v504_v59, %v257_v62  ;;  %v591_v0 = vpop.f32.mrb[2].mxu1 }
 0x1be   :  { %v269_v1 = vadd.f32 %v591_v0, %v504_v59  ;;  %v260_v2 = vpop.f32.mrb[3].mxu1  ;;  %v290_v4 = vmax.f32 %v266_v61, 0.0 }
 0x1bf   :  { %v261_v3 = vadd.f32 %v504_v59, %v260_v2  ;;  %v288_v6 = vmax.f32 %v258_v63, 0.0 }
 0x1c0   :  { %v291_v5 = vmax.f32 %v269_v1, 0.0 }
 0x1c1   :  { %v289_v7 = vmax.f32 %v261_v3, 0.0 }
 0x1c2   :  { %v297_v8 = vpack.c.bf16 %v291_v5, %v290_v4 }
 0x1c3   :  { %v296_v9 = vpack.c.bf16 %v289_v7, %v288_v6  ;;  %v594_v10 = vpop.f32.mrb[4].mxu1 }
 0x1c4   :  { %v282_v11 = vadd.f32 %v594_v10, %v504_v59  ;;  %v273_v12 = vpop.f32.mrb[5].mxu1 }
 0x1c5   :  { %v274_v13 = vadd.f32 %v504_v59, %v273_v12  ;;  %v595_v14 = vpop.f32.mrb[6].mxu1  ;;  %612 = vmatprep.mubr.bf16.mxu0 %v296_v9 }
 0x1c6   :  { %v285_v15 = vadd.f32 %v595_v14, %v504_v59  ;;  %v276_v16 = vpop.f32.mrb[7].mxu1  ;;  %613 = vmatmul.mubr.bf16.vlgmr.msra.gmra.mrb[8].mxu0 %v297_v8  ;;  %v294_v18 = vmax.f32 %v282_v11, 0.0 }
 0x1c7   :  { %v277_v17 = vadd.f32 %v504_v59, %v276_v16  ;;  %v292_v20 = vmax.f32 %v274_v13, 0.0 }
 0x1c8   :  { %v295_v19 = vmax.f32 %v285_v15, 0.0 }
 0x1c9   :  { %v293_v21 = vmax.f32 %v277_v17, 0.0 }
 0x1ca   :  { %v299_v22 = vpack.c.bf16 %v295_v19, %v294_v18 }
 0x1cb   :  { %v298_v23 = vpack.c.bf16 %v293_v21, %v292_v20 }
 0x1cd   :  { %616 = vmatprep.mubr.bf16.mxu0 %v298_v23 }
 0x1ce   :  { %617 = vmatmul.mubr.bf16.gmra.mrb[12].mxu0 %v299_v22 }
 0x299   :  { %v614_v25 = vpop.f32.mrb[8].mxu0 }
 0x29a   :  { %v414_v26 = vadd.f32 %v614_v25, %v513_v24  ;;  %v405_v27 = vpop.f32.mrb[9].mxu0 }
 0x29b   :  { %v406_v28 = vadd.f32 %v513_v24, %v405_v27  ;;  %v615_v29 = vpop.f32.mrb[10].mxu0 }
 0x29c   :  { %v524_v30 = vmul.f32 -1.442695, %v414_v26  ;;  %v417_v31 = vadd.f32 %v615_v29, %v513_v24  ;;  %v408_v32 = vpop.f32.mrb[11].mxu0 }
 0x29d   :  { %v522_v33 = vmul.f32 -1.442695, %v406_v28  ;;  %v409_v34 = vadd.f32 %v513_v24, %v408_v32 }
 0x29e   :  { %638 = vpow2.f32 %v524_v30  ;;  %v525_v35 = vmul.f32 -1.442695, %v417_v31 }
 0x29f   :  { %640 = vpow2.f32 %v522_v33  ;;  %v523_v36 = vmul.f32 -1.442695, %v409_v34 }
 0x2a0   :  { %642 = vpow2.f32 %v525_v35 }
 0x2a1   :  { %644 = vpow2.f32 %v523_v36  ;;  %v618_v37 = vpop.f32.mrb[12].mxu0 }
 0x2a2   :  { %v430_v38 = vadd.f32 %v618_v37, %v513_v24  ;;  %v421_v39 = vpop.f32.mrb[13].mxu0 }
 0x2a3   :  { %v422_v40 = vadd.f32 %v513_v24, %v421_v39  ;;  %v619_v41 = vpop.f32.mrb[14].mxu0 }
 0x2a4   :  { %v528_v42 = vmul.f32 -1.442695, %v430_v38  ;;  %v433_v43 = vadd.f32 %v619_v41, %v513_v24  ;;  %v424_v44 = vpop.f32.mrb[15].mxu0 }
 0x2a5   :  { %v526_v45 = vmul.f32 -1.442695, %v422_v40  ;;  %v425_v46 = vadd.f32 %v513_v24, %v424_v44 }
 0x2a6   :  { %646 = vpow2.f32 %v528_v42  ;;  %v529_v47 = vmul.f32 -1.442695, %v433_v43 }
 0x2a7   :  { %648 = vpow2.f32 %v526_v45  ;;  %v527_v48 = vmul.f32 -1.442695, %v425_v46 }
 0x2a8   :  { %v639_v49 = vpop.eup %638  ;;  %650 = vpow2.f32 %v529_v47 }
 0x2a9   :  { %v641_v50 = vpop.eup %640  ;;  %v462_v51 = vadd.f32 1.0, %v639_v49  ;;  %652 = vpow2.f32 %v527_v48 }
 0x2aa   :  { %v643_v52 = vpop.eup %642  ;;  %v460_v53 = vadd.f32 1.0, %v641_v50 }
 0x2ab   :  { %v645_v54 = vpop.eup %644  ;;  %654 = vrcp.f32 %v462_v51  ;;  %v463_v55 = vadd.f32 1.0, %v643_v52 }
 0x2ac   :  { %656 = vrcp.f32 %v460_v53  ;;  %v461_v56 = vadd.f32 1.0, %v645_v54 }
 0x2ad   :  { %658 = vrcp.f32 %v463_v55 }
 0x2ae   :  { %660 = vrcp.f32 %v461_v56 }
 0x2b0   :  { %v647_v57 = vpop.eup %646 }
 0x2b1   :  { %v649_v58 = vpop.eup %648  ;;  %v466_v59 = vadd.f32 1.0, %v647_v57 }
 0x2b2   :  { %v651_v60 = vpop.eup %650  ;;  %v464_v61 = vadd.f32 1.0, %v649_v58 }
 0x2b3   :  { %v653_v62 = vpop.eup %652  ;;  %662 = vrcp.f32 %v466_v59  ;;  %v467_v63 = vadd.f32 1.0, %v651_v60 }
 0x2b4   :  { %664 = vrcp.f32 %v464_v61  ;;  %v465_v0 = vadd.f32 1.0, %v653_v62 }
 0x2b5   :  { %v655_v1 = vpop.eup %654  ;;  %666 = vrcp.f32 %v467_v63 }
 0x2b6   :  { %v657_v2 = vpop.eup %656  ;;  %487 = vst.msk [vmem:[%s840_s7 + $0x10] sm:$0xff] %vm484_vm1, %v655_v1  ;;  %668 = vrcp.f32 %v465_v0 }
 0x2b7   :  { %v659_v3 = vpop.eup %658  ;;  %485 = vst.msk [vmem:[%s840_s7] sm:$0xff] %vm484_vm1, %v657_v2 }
 0x2b8   :  { %v661_v4 = vpop.eup %660  ;;  %488 = vst.msk [vmem:[%s840_s7 + $0x18] sm:$0xff] %vm484_vm1, %v659_v3 }
 0x2b9   :  { %486 = vst.msk [vmem:[%s840_s7 + $0x8] sm:$0xff] %vm484_vm1, %v661_v4 }
 0x2bd   :  { %v663_v5 = vpop.eup %662 }
 0x2be   :  { %v665_v6 = vpop.eup %664  ;;  %491 = vst.msk [vmem:[%s840_s7 + $0x30] sm:$0xff] %vm484_vm1, %v663_v5 }
 0x2bf   :  { %v667_v7 = vpop.eup %666  ;;  %489 = vst.msk [vmem:[%s840_s7 + $0x20] sm:$0xff] %vm484_vm1, %v665_v6 }
 0x2c0   :  { %v669_v8 = vpop.eup %668  ;;  %492 = vst.msk [vmem:[%s840_s7 + $0x38] sm:$0xff] %vm484_vm1, %v667_v7 }
 0x2c1   :  { %490 = vst.msk [vmem:[%s840_s7 + $0x28] sm:$0xff] %vm484_vm1, %v669_v8 }

</bundles_post_ra>
